<compile_context>
chip_gen: v7x
topology: tpu7x:2x2x1
jax: 0.10.0
libtpu: 0.0.40
codegen_flags: <defaults>
</compile_context>

<pallas_src>
import jax
import jax.numpy as jnp
from jax.experimental import pallas as pl
from jax.experimental.pallas import tpu as pltpu


def _round_up(x, m):
    return ((x + m - 1) // m) * m


def _gcn_linear_kernel(x_ref, wt_ref, dinv_ref, o_ref):
    # XW_scaled = (X @ W^T) * dinv   (column scaling of the propagation input)
    xw = jnp.dot(x_ref[...], wt_ref[...], preferred_element_type=jnp.float32)
    o_ref[...] = (xw * dinv_ref[...]).astype(o_ref.dtype)


def _gcn_propagate_kernel(a_ref, xw_ref, dinv_ref, b_ref, alpha_ref,
                          o_ref, acc_ref):
    # a_ref:    [tm, tk]   tile of A_hat (A + I), A_hat[target, source]
    # xw_ref:   [tk, Hp]   tile of dinv-scaled XW
    # dinv_ref: [tm, 1]    row (target) normalization, f32
    # b_ref:    [1,  Hp]   bias, f32
    # alpha_ref:[1, 1]     PReLU slope (SMEM scalar)
    # acc_ref:  [tm, Hp]   f32 accumulator scratch
    k = pl.program_id(1)

    @pl.when(k == 0)
    def _():
        acc_ref[...] = jnp.zeros_like(acc_ref)

    acc_ref[...] += jnp.dot(a_ref[...], xw_ref[...],
                            preferred_element_type=jnp.float32)

    @pl.when(k == pl.num_programs(1) - 1)
    def _():
        h = acc_ref[...] * dinv_ref[...] + b_ref[...]
        alpha = alpha_ref[0, 0]
        o_ref[...] = jnp.where(h >= 0.0, h, alpha * h).astype(o_ref.dtype)


def dgi_encoder_forward(a_hat, x, w, b, alpha, *, tile=256,
                        compute_dtype=jnp.bfloat16):
    """DGIEncoder forward.

    a_hat: [N, N] dense adjacency with self loops, a_hat[target, source]
    x:     [N, F] node features
    w:     [H, F] GCNConv linear weight (torch layout: out x in)
    b:     [H]    GCNConv bias
    alpha: scalar PReLU slope
    """
    N, F = x.shape
    H = w.shape[0]

    # ---- host-side (XLA) glue: normalization vector, padding, dtype casts ----
    a_f32 = a_hat.astype(jnp.float32)
    # Degree over sources for each target row (matches PyG gcn_norm for
    # A_hat[target, source]); kept in f32 for precision.
    deg = jnp.sum(a_f32, axis=1, keepdims=True)                 # [N, 1]
    dinv = jnp.where(deg > 0.0, jax.lax.rsqrt(deg), 0.0)        # deg^-1/2, inf -> 0

    tm = tk = min(tile, _round_up(N, 128))
    n_pad = _round_up(N, tm)
    h_pad = _round_up(H, 128)          # lane-dense output blocks
    itemsize = jnp.dtype(compute_dtype).itemsize

    a_p = jnp.pad(a_f32, ((0, n_pad - N), (0, n_pad - N))).astype(compute_dtype)
    x_p = jnp.pad(x.astype(jnp.float32),
                  ((0, n_pad - N), (0, 0))).astype(compute_dtype)
    wt_p = jnp.pad(w.astype(jnp.float32).T,                     # [F, Hp]
                   ((0, 0), (0, h_pad - H))).astype(compute_dtype)
    dinv_p = jnp.pad(dinv, ((0, n_pad - N), (0, 0)))            # [Np, 1] f32
    b_p = jnp.pad(b.reshape(1, H).astype(jnp.float32),
                  ((0, 0), (0, h_pad - H)))                     # [1, Hp] f32
    alpha_arr = jnp.full((1, 1), alpha, dtype=jnp.float32)

    # ---- stage 1: XW_scaled = dinv * (X @ W^T) ----
    xw_scaled = pl.pallas_call(
        _gcn_linear_kernel,
        out_shape=jax.ShapeDtypeStruct((n_pad, h_pad), compute_dtype),
        grid=(n_pad // tm,),
        in_specs=[
            pl.BlockSpec((tm, F), lambda i: (i, 0)),
            pl.BlockSpec((F, h_pad), lambda i: (0, 0)),
            pl.BlockSpec((tm, 1), lambda i: (i, 0)),
        ],
        out_specs=pl.BlockSpec((tm, h_pad), lambda i: (i, 0)),
        compiler_params=pltpu.CompilerParams(
            dimension_semantics=("parallel",),
            vmem_limit_bytes=32 * 1024 * 1024,
        ),
    )(x_p, wt_p, dinv_p)

    # ---- stage 2: h = dinv * (A_hat @ XW_scaled) + b ; PReLU ----
    out_p = pl.pallas_call(
        _gcn_propagate_kernel,
        out_shape=jax.ShapeDtypeStruct((n_pad, h_pad), jnp.float32),
        grid=(n_pad // tm, n_pad // tk),
        in_specs=[
            pl.BlockSpec((tm, tk), lambda i, k: (i, k)),        # A_hat tile
            pl.BlockSpec((tk, h_pad), lambda i, k: (k, 0)),     # XW_scaled tile
            pl.BlockSpec((tm, 1), lambda i, k: (i, 0)),         # row dinv
            pl.BlockSpec((1, h_pad), lambda i, k: (0, 0)),      # bias
            pl.BlockSpec(memory_space=pltpu.MemorySpace.SMEM),  # PReLU alpha
        ],
        out_specs=pl.BlockSpec((tm, h_pad), lambda i, k: (i, 0)),
        scratch_shapes=[pltpu.VMEM((tm, h_pad), jnp.float32)],
        compiler_params=pltpu.CompilerParams(
            dimension_semantics=("parallel", "arbitrary"),
            vmem_limit_bytes=32 * 1024 * 1024,
        ),
        cost_estimate=pl.CostEstimate(
            flops=2 * n_pad * n_pad * h_pad,
            transcendentals=0,
            bytes_accessed=(n_pad * n_pad * itemsize
                            + n_pad * h_pad * (itemsize + 4)),
        ),
    )(a_p, xw_scaled, dinv_p, b_p, alpha_arr)

    return out_p[:N, :H]


def build_dense_adj_with_self_loops(edge_index, edge_weight, num_nodes):
    """Glue: dense A_hat[target, source] = w(src->tgt) plus identity self loops."""
    src = edge_index[0]
    tgt = edge_index[1]
    if edge_weight is None:
        edge_weight = jnp.ones(src.shape[0], dtype=jnp.float32)
    a = jnp.zeros((num_nodes, num_nodes), dtype=jnp.float32)
    a = a.at[tgt, src].add(edge_weight)
    a = a + jnp.eye(num_nodes, dtype=jnp.float32)   # gcn_norm add_self_loops(fill=1)
    return a


def reference_forward(a_hat, x, w, b, alpha):
    deg = jnp.sum(a_hat, axis=1, keepdims=True)
    dinv = jnp.where(deg > 0.0, jax.lax.rsqrt(deg), 0.0)
    a_norm = dinv * a_hat * dinv.T
    h = a_norm @ (x @ w.T) + b
    return jnp.where(h >= 0.0, h, alpha * h)


if __name__ == "__main__":
    key = jax.random.PRNGKey(0)
    N = 8            # number of nodes
    F = 16           # in_channels
    H = 32           # hidden_channels (small stand-in for 512)

    k_x, k_w = jax.random.split(key)
    x = jax.random.normal(k_x, (N, F), dtype=jnp.float32)

    # Small undirected ring graph, no explicit edge_weight (defaults to 1).
    src = jnp.arange(N)
    dst = (src + 1) % N
    edge_index = jnp.stack(
        [jnp.concatenate([src, dst]), jnp.concatenate([dst, src])], axis=0
    ).astype(jnp.int32)

    # Deterministic parameter init: glorot-like weight, zero bias, PReLU alpha=0.25.
    limit = jnp.sqrt(6.0 / (F + H))
    w = jax.random.uniform(k_w, (H, F), minval=-limit, maxval=limit, dtype=jnp.float32)
    b = jnp.zeros((H,), dtype=jnp.float32)
    alpha = 0.25

    a_hat = build_dense_adj_with_self_loops(edge_index, None, N)
    ref = reference_forward(a_hat, x, w, b.reshape(1, H), alpha)

    # f32 matmul path (tight tolerance).
    out_f32 = dgi_encoder_forward(a_hat, x, w, b, alpha,
                                  compute_dtype=jnp.float32)
    out_f32 = jax.block_until_ready(out_f32)
    assert out_f32.shape == (N, H)
    assert jnp.allclose(out_f32, ref, atol=1e-4, rtol=1e-4)

    # Default bf16 matmul path (f32 accumulation / epilogue), looser tolerance.
    out_bf16 = dgi_encoder_forward(a_hat, x, w, b, alpha)
    out_bf16 = jax.block_until_ready(out_bf16)
    assert out_bf16.shape == (N, H)
    assert jnp.allclose(out_bf16, ref, atol=5e-2, rtol=5e-2)

    print("KERNEL_OK")
</pallas_src>

<mosaic_0001>
module attributes {stable_mosaic.version = 11 : i64} {
  func.func @_gcn_linear_kernel(%arg0: i32, %arg1: memref<128x16xf32, #tpu.memory_space<vmem>>, %arg2: memref<16x128xf32, #tpu.memory_space<vmem>>, %arg3: memref<128x1xf32, #tpu.memory_space<vmem>>, %arg4: memref<128x128xf32, #tpu.memory_space<vmem>>) attributes {dimension_semantics = [#tpu.dimension_semantics<parallel>], iteration_bounds = array<i64: 1>, scalar_prefetch = 0 : i64, scratch_operands = 0 : i64, tpu.core_type = #tpu.core_type<tc>, window_params = [{transform_indices = @transform_0, window_bounds = array<i64: 128, 16>}, {pipeline_mode = #tpu.pipeline_mode<synchronous>, transform_indices = @transform_1, window_bounds = array<i64: 16, 128>}, {transform_indices = @transform_2, window_bounds = array<i64: 128, 1>}, {transform_indices = @transform_3, window_bounds = array<i64: 128, 128>}]} {
    %c0 = arith.constant 0 : index
    %c0_0 = arith.constant 0 : index
    %0 = vector.load %arg1[%c0, %c0_0] : memref<128x16xf32, #tpu.memory_space<vmem>>, vector<128x16xf32>
    %c0_1 = arith.constant 0 : index
    %c0_2 = arith.constant 0 : index
    %1 = vector.load %arg2[%c0_1, %c0_2] : memref<16x128xf32, #tpu.memory_space<vmem>>, vector<16x128xf32>
    %cst = arith.constant dense<0.000000e+00> : vector<128x128xf32>
    %2 = tpu.matmul %0, %1, %cst {dimension_numbers = #tpu.dot_dimension_numbers<[1], [0], [0], [1], [0, 0, 1, 1], [], []>} : vector<128x16xf32>, vector<16x128xf32>, vector<128x128xf32> -> vector<128x128xf32>
    %c0_3 = arith.constant 0 : index
    %c0_4 = arith.constant 0 : index
    %3 = vector.load %arg3[%c0_3, %c0_4] : memref<128x1xf32, #tpu.memory_space<vmem>>, vector<128x1xf32>
    %4 = vector.broadcast %3 : vector<128x1xf32> to vector<128x128xf32>
    %5 = arith.mulf %2, %4 : vector<128x128xf32>
    %c0_5 = arith.constant 0 : index
    %c0_6 = arith.constant 0 : index
    %6 = vector.load %arg4[%c0_5, %c0_6] : memref<128x128xf32, #tpu.memory_space<vmem>>, vector<128x128xf32>
    tpu.vector_store %arg4[%c0_5, %c0_6], %5 {strides = array<i32>} : memref<128x128xf32, #tpu.memory_space<vmem>>, vector<128x128xf32>,
    return
  }
  func.func @transform_0(%arg0: i32) -> (i32, i32) {
    %c0_i32 = arith.constant 0 : i32
    %c0_i32_0 = arith.constant 0 : i32
    return %arg0, %c0_i32 : i32, i32
  }
  func.func @transform_1(%arg0: i32) -> (i32, i32) {
    %c0_i32 = arith.constant 0 : i32
    %c0_i32_0 = arith.constant 0 : i32
    %c0_i32_1 = arith.constant 0 : i32
    return %c0_i32, %c0_i32_0 : i32, i32
  }
  func.func @transform_2(%arg0: i32) -> (i32, i32) {
    %c0_i32 = arith.constant 0 : i32
    %c0_i32_0 = arith.constant 0 : i32
    return %arg0, %c0_i32 : i32, i32
  }
  func.func @transform_3(%arg0: i32) -> (i32, i32) {
    %c0_i32 = arith.constant 0 : i32
    %c0_i32_0 = arith.constant 0 : i32
    return %arg0, %c0_i32 : i32, i32
  }
}

</mosaic_0001>

<bundles_post_ra>
// kernel: tpu_custom_call.1
= control target key start
LH: loop header
LB: loop body
LE: loop exit
PB: predicated region body
PF: predicated region fallthrough
CT: control target
= control target key end

     0   :  { %vm33_vm0 = vcmask 130048   ;;  %v469_v5 = vmov 0   ;;  %s623_s0 = inlined_call_operand.vmem [shape: f32[128,16], index: 0, kind: input, shape index: {}]   ;;  %s624_s1 = inlined_call_operand.vmem [shape: f32[16,128], index: 1, kind: input, shape index: {}]   ;;  %s625_s2 = inlined_call_operand.vmem [shape: f32[128,1], index: 2, kind: input, shape index: {}]   ;;  %s626_s3 = inlined_call_operand.hbm [shape: f32[128,128], index: 3, kind: output, shape index: {}]  }
   0x1   :  { %v31_v0 = vld [vmem:[%s624_s1] sm:$0xff]  ;;  %v32_v1 = vld [vmem:[%s624_s1 + $0x8] sm:$0xff]  ;;  %444 = vset.pattern.permute.xlu1 %v469_v5  ;;  %443 = vset.pattern.permute.xlu0 %v469_v5  ;;  %v17_v8 = vld [vmem:[%s623_s0 + $0x10] sm:$0xff] }
   0x2   :  { %v15_v2 = vld [vmem:[%s623_s0] sm:$0xff]  ;;  %v433_v3 = vpack.c.bf16 %v32_v1, %v31_v0  ;;  %v16_v6 = vld [vmem:[%s623_s0 + $0x8] sm:$0xff]  ;;  %v25_v9 = vld [vmem:[%s623_s0 + $0x50] sm:$0xff] }
   0x3   :  { %409 = vmatprep.mubr.msk.f32.mxu0 %vm33_vm0, %v15_v2  ;;  %v23_v4 = vld [vmem:[%s623_s0 + $0x40] sm:$0xff]  ;;  %v24_v7 = vld [vmem:[%s623_s0 + $0x48] sm:$0xff]  ;;  %v229_v10 = vld [vmem:[%s625_s2 + $0x10] sm:$0xff] }
   0x4   :  { %421 = vmatprep.mubr.msk.f32.mxu1 %vm33_vm0, %v23_v4  ;;  %434 = vmatprep.subr.bf16.mxu0 %v433_v3  ;;  %v227_v11 = vld [vmem:[%s625_s2] sm:$0xff]  ;;  %v18_v12 = vld [vmem:[%s623_s0 + $0x18] sm:$0xff]  ;;  %v228_v17 = vld [vmem:[%s625_s2 + $0x8] sm:$0xff] }
   0x5   :  { %437 = vmatprep.subr.bf16.mxu1 %v433_v3  ;;  %436 = vmatpush3.bf16.msra.mxu0 %v433_v3  ;;  %v26_v13 = vld [vmem:[%s623_s0 + $0x58] sm:$0xff]  ;;  %v19_v14 = vld [vmem:[%s623_s0 + $0x20] sm:$0xff] }
   0x6   :  { %438 = vmatpush3.bf16.msra.mxu1 %v433_v3  ;;  %v27_v15 = vld [vmem:[%s623_s0 + $0x60] sm:$0xff]  ;;  %255 = vperm.xlu1 %444, %v229_v10   ;;  %v230_v16 = vld [vmem:[%s625_s2 + $0x18] sm:$0xff] }
   0x7   :  { %245 = vperm.xlu0 %443, %v227_v11  }
   0x8   :  { %410 = vmatmul.mubr.msk.f32.vlgmr.msra.gmra.mrb[0].mxu0 %vm33_vm0, %v16_v6 }
   0x9   :  { %422 = vmatmul.mubr.msk.f32.vlgmr.msra.gmra.mrb[0].mxu1 %vm33_vm0, %v24_v7  ;;  %412 = vmatprep.mubr.msk.f32.mxu0 %vm33_vm0, %v17_v8 }
   0xa   :  { %424 = vmatprep.mubr.msk.f32.mxu1 %vm33_vm0, %v25_v9 }
   0xc   :  { %413 = vmatmul.mubr.msk.f32.gmra.mrb[2].mxu0 %vm33_vm0, %v18_v12 }
   0xd   :  { %425 = vmatmul.mubr.msk.f32.gmra.mrb[2].mxu1 %vm33_vm0, %v26_v13 }
   0xe   :  { %8 = vsyncpa [#allocation3], 0  ;;  %415 = vmatprep.mubr.msk.f32.mxu0 %vm33_vm0, %v19_v14  ;;  %427 = vmatprep.mubr.msk.f32.mxu1 %vm33_vm0, %v27_v15  ;;  %v20_v18 = vld [vmem:[%s623_s0 + $0x28] sm:$0xff]  ;;  %v21_v20 = vld [vmem:[%s623_s0 + $0x30] sm:$0xff] }
   0xf   :  { %v28_v19 = vld [vmem:[%s623_s0 + $0x68] sm:$0xff]  ;;  %v29_v21 = vld [vmem:[%s623_s0 + $0x70] sm:$0xff]  ;;  %260 = vperm.xlu1 %444, %v230_v16   ;;  %250 = vperm.xlu0 %443, %v228_v17   ;;  %v231_v23 = vld [vmem:[%s625_s2 + $0x20] sm:$0xff] }
  0x10   :  { %v232_v22 = vld [vmem:[%s625_s2 + $0x28] sm:$0xff]  ;;  %416 = vmatmul.mubr.msk.f32.gmra.mrb[4].mxu0 %vm33_vm0, %v20_v18  ;;  %v22_v24 = vld [vmem:[%s623_s0 + $0x38] sm:$0xff]  ;;  %v233_v27 = vld [vmem:[%s625_s2 + $0x30] sm:$0xff] }
  0x11   :  { %428 = vmatmul.mubr.msk.f32.gmra.mrb[4].mxu1 %vm33_vm0, %v28_v19  ;;  %418 = vmatprep.mubr.msk.f32.mxu0 %vm33_vm0, %v21_v20  ;;  %v30_v25 = vld [vmem:[%s623_s0 + $0x78] sm:$0xff]  ;;  %v236_v28 = vld [vmem:[%s625_s2 + $0x48] sm:$0xff]  ;;  %v235_v29 = vld [vmem:[%s625_s2 + $0x40] sm:$0xff] }
  0x12   :  { %430 = vmatprep.mubr.msk.f32.mxu1 %vm33_vm0, %v29_v21  ;;  %v234_v26 = vld [vmem:[%s625_s2 + $0x38] sm:$0xff]  ;;  %v237_v31 = vld [vmem:[%s625_s2 + $0x50] sm:$0xff]  ;;  %v240_v32 = vld [vmem:[%s625_s2 + $0x68] sm:$0xff] }
  0x13   :  { %270 = vperm.xlu1 %444, %v232_v22   ;;  %265 = vperm.xlu0 %443, %v231_v23   ;;  %v238_v30 = vld [vmem:[%s625_s2 + $0x58] sm:$0xff]  ;;  %v239_v33 = vld [vmem:[%s625_s2 + $0x60] sm:$0xff]  ;;  %v241_v35 = vld [vmem:[%s625_s2 + $0x70] sm:$0xff] }
  0x14   :  { %419 = vmatmul.mubr.msk.f32.gmra.mrb[6].mxu0 %vm33_vm0, %v22_v24  ;;  %v242_v34 = vld [vmem:[%s625_s2 + $0x78] sm:$0xff]  ;;  %s470_s2 = smov [#allocation2]  }
  0x15   :  { %431 = vmatmul.mubr.msk.f32.gmra.mrb[6].mxu1 %vm33_vm0, %v30_v25  ;;  %s360_s22 = sshll.u32 %s470_s2, 4  ;;  %s361_s22 = int_to_ptr.vmem [resolvable:$true] %s360_s22 }
  0x16   :  { %s445_s23 = scalar_lea.vmem %s361_s22, 2048  ;;  %p450_p1 = scmp.lt.s32.totalorder %s361_s22, %s361_s22 }
  0x17   :  { %280 = vperm.xlu1 %444, %v234_v26   ;;  %275 = vperm.xlu0 %443, %v233_v27   ;;  %p446_p0 = scmp.ne.s32.totalorder %s361_s22, %s445_s23  ;;  %p451_p2 = scmp.lt.s32.totalorder %s445_s23, %s445_s23 }
  0x19   :  { %p452_p3 = por %p451_p2, %p450_p1 }
  0x1b   :  { %290 = vperm.xlu1 %444, %v236_v28   ;;  %285 = vperm.xlu0 %443, %v235_v29   ;;  %p453_p4 = pnand %p452_p3, %p446_p0 }
  0x1f   :  { %300 = vperm.xlu1 %444, %v238_v30   ;;  %295 = vperm.xlu0 %443, %v237_v31  }
  0x23   :  { %310 = vperm.xlu1 %444, %v240_v32   ;;  %305 = vperm.xlu0 %443, %v239_v33  }
  0x27   :  { %320 = vperm.xlu1 %444, %v242_v34   ;;  %315 = vperm.xlu0 %443, %v241_v35  }
  0x85   :  { %v256_v36 = vpop.permute.xlu1 %255 }
  0x86   :  { %v246_v37 = vpop.permute.xlu0 %245 }
  0x8e   :  { %v261_v38 = vpop.permute.xlu1 %260  ;;  %v251_v39 = vpop.permute.xlu0 %250 }
  0x92   :  { %v271_v40 = vpop.permute.xlu1 %270  ;;  %v266_v41 = vpop.permute.xlu0 %265 }
  0x96   :  { %v281_v42 = vpop.permute.xlu1 %280  ;;  %v276_v43 = vpop.permute.xlu0 %275 }
  0x9a   :  { %v291_v44 = vpop.permute.xlu1 %290  ;;  %v286_v45 = vpop.permute.xlu0 %285 }
  0x9e   :  { %v301_v46 = vpop.permute.xlu1 %300  ;;  %v296_v47 = vpop.permute.xlu0 %295 }
  0xa2   :  { %v311_v56 = vpop.permute.xlu1 %310  ;;  %v306_v57 = vpop.permute.xlu0 %305 }
  0xa6   :  { %v321_v10 = vpop.permute.xlu1 %320  ;;  %v316_v11 = vpop.permute.xlu0 %315 }
  0xdb   :  { %v411_v48 = vpop.f32.mrb[0].mxu0 }
  0xdc   :  { %v423_v49 = vpop.f32.mrb[0].mxu1  ;;  %v324_v50 = vmul.f32 %v411_v48, %v251_v39  ;;  %v148_v52 = vpop.f32.mrb[1].mxu0 }
  0xdd   :  { %v332_v51 = vmul.f32 %v423_v49, %v291_v44  ;;  %v188_v53 = vpop.f32.mrb[1].mxu1  ;;  %v323_v54 = vmul.f32 %v246_v37, %v148_v52 }
  0xde   :  { %v331_v55 = vmul.f32 %v286_v45, %v188_v53  ;;  %340 = vst [vmem:[#allocation2 + $0x8] sm:$0xff] %v324_v50 }
  0xdf   :  { %348 = vst [vmem:[#allocation2 + $0x48] sm:$0xff] %v332_v51  ;;  %339 = vst [vmem:[#allocation2] sm:$0xff] %v323_v54  ;;  %v414_v58 = vpop.f32.mrb[2].mxu0 }
  0xe0   :  { %347 = vst [vmem:[#allocation2 + $0x40] sm:$0xff] %v331_v55  ;;  %v426_v59 = vpop.f32.mrb[2].mxu1  ;;  %v326_v60 = vmul.f32 %v414_v58, %v261_v38  ;;  %v158_v62 = vpop.f32.mrb[3].mxu0 }
  0xe1   :  { %v334_v61 = vmul.f32 %v426_v59, %v301_v46  ;;  %v198_v63 = vpop.f32.mrb[3].mxu1  ;;  %v325_v0 = vmul.f32 %v256_v36, %v158_v62 }
  0xe2   :  { %v333_v1 = vmul.f32 %v296_v47, %v198_v63  ;;  %342 = vst [vmem:[#allocation2 + $0x18] sm:$0xff] %v326_v60 }
  0xe3   :  { %350 = vst [vmem:[#allocation2 + $0x58] sm:$0xff] %v334_v61  ;;  %341 = vst [vmem:[#allocation2 + $0x10] sm:$0xff] %v325_v0  ;;  %v417_v2 = vpop.f32.mrb[4].mxu0 }
  0xe4   :  { %349 = vst [vmem:[#allocation2 + $0x50] sm:$0xff] %v333_v1  ;;  %v429_v3 = vpop.f32.mrb[4].mxu1  ;;  %v328_v4 = vmul.f32 %v417_v2, %v271_v40  ;;  %v168_v6 = vpop.f32.mrb[5].mxu0 }
  0xe5   :  { %v336_v5 = vmul.f32 %v429_v3, %v311_v56  ;;  %v208_v7 = vpop.f32.mrb[5].mxu1  ;;  %v327_v8 = vmul.f32 %v266_v41, %v168_v6 }
  0xe6   :  { %v335_v9 = vmul.f32 %v306_v57, %v208_v7  ;;  %344 = vst [vmem:[#allocation2 + $0x28] sm:$0xff] %v328_v4 }
  0xe7   :  { %352 = vst [vmem:[#allocation2 + $0x68] sm:$0xff] %v336_v5  ;;  %343 = vst [vmem:[#allocation2 + $0x20] sm:$0xff] %v327_v8  ;;  %v420_v12 = vpop.f32.mrb[6].mxu0 }
  0xe8   :  { %351 = vst [vmem:[#allocation2 + $0x60] sm:$0xff] %v335_v9  ;;  %v432_v13 = vpop.f32.mrb[6].mxu1  ;;  %v330_v14 = vmul.f32 %v420_v12, %v281_v42  ;;  %v178_v16 = vpop.f32.mrb[7].mxu0 }
  0xe9   :  { %v338_v15 = vmul.f32 %v432_v13, %v321_v10  ;;  %v218_v17 = vpop.f32.mrb[7].mxu1  ;;  %v329_v18 = vmul.f32 %v276_v43, %v178_v16 }
  0xea   :  { %v337_v19 = vmul.f32 %v316_v11, %v218_v17  ;;  %346 = vst [vmem:[#allocation2 + $0x38] sm:$0xff] %v330_v14 }
  0xeb   :  { %354 = vst [vmem:[#allocation2 + $0x78] sm:$0xff] %v338_v15  ;;  %345 = vst [vmem:[#allocation2 + $0x30] sm:$0xff] %v329_v18 }
  0xec   :  { %353 = vst [vmem:[#allocation2 + $0x70] sm:$0xff] %v337_v19 }
  0xed   :  { %456 = shalt.err (!%p453_p4)
}
  0xee   :  { %s457_s26 = scalar_lea.hbm %s626_s3, 2048 }
  0xef   :  { %p458_p5 = scmp.ne.s32.totalorder %s626_s3, %s457_s26  ;;  %p461_p6 = scmp.lt.u32.totalorder %s457_s26, %s626_s3 }
  0xf1   :  { %p463_p7 = pnand %p461_p6, %p458_p5 }
  0xf3   :  { %466 = shalt.err (!%p463_p7)
}
  0xf4   :  { %s471_s4 = smov 128   ;;  %s472_s5 = smov 8  }
  0xf5   :  { %366 = dma.vmem_to_hbm [thread:$0]  %s361_s22, 2048, %s626_s3, [#allocation3], %s471_s4, %s471_s4, %s472_s5  }
  0xf6   :  { %467 = dma.done.wait [#allocation3], 2048  }
  0xf7   :  { %468 = vsyncadd [#allocation3], 4294965248 }
  0xf8   :  { %370 = vsyncpa [#allocation3], 1 }

</bundles_post_ra>
